<compile_context>
chip_gen: v5e
topology: v5e:2x2
jax: 0.10.0
libtpu: 0.0.40
codegen_flags: <defaults>
</compile_context>

<pallas_src>
import jax
import jax.numpy as jnp
from jax.experimental import pallas as pl
from jax.experimental.pallas import tpu as pltpu


def _model_kernel(x1_ref, rhs_ref, wf_ref, out_ref):
    M = x1_ref.shape[0]            # x1 is (M, M)
    N = wf_ref.shape[0]            # folded weights are (N, 3)

    x1 = x1_ref[...]

    # One fused MXU op: big = x1 @ [x1 | x2] = [x1@x1 | p], lane-adjacent so the
    # whole 'b' segment of the output is just `big`.
    big = jnp.dot(x1, rhs_ref[...], preferred_element_type=jnp.float32)   # (M, M+N)
    p = big[:, M:]                                                        # (M, N) = x1 @ x2

    # a, c, e fused into one thin 3-column matmul: v1 @ w == p @ (w[:N] + w[N:]).
    ace = jnp.dot(p, wf_ref[...], preferred_element_type=jnp.float32)     # (M, 3)

    # Single assembled lane-dense store (no zero-fill, no per-segment masked stores).
    # Output layout: [a | x1@x1 | p | c | p | p | e | p | p]  ==  [a, b, c, d, e, f]
    slab = jnp.concatenate(
        [ace[:, 0:1], big, ace[:, 1:2], p, p, ace[:, 2:3], p, p], axis=1)
    out_ref[...] = slab


def model_forward(x1, x2, w1, w2, w3):
    M, Mk = x1.shape
    M2, N = x2.shape
    assert Mk == M2 == M, "shape-consistent generalization requires x1 square, rows match"

    out_cols = 3 + M + 5 * N   # logical output width (matches the torch op graph)

    # Host-side input packing (layout plumbing, not compute-hoisting):
    #   rhs = [x1 | x2] so the kernel fuses x1@x1 and x1@x2 into one MXU op.
    rhs = jnp.concatenate([x1, x2], axis=1).astype(jnp.float32)           # (M, M+N)
    #   Weight folding: v1 @ w == p @ (w[:N] + w[N:]); stack the 3 weights into one
    #   (N, 3) matrix so a/c/e come from a single thin matmul.
    wf = jnp.concatenate(
        [w1[:N] + w1[N:], w2[:N] + w2[N:], w3[:N] + w3[N:]], axis=1
    ).astype(jnp.float32)                                                 # (N, 3)

    vmem_spec = pl.BlockSpec(memory_space=pltpu.MemorySpace.VMEM)
    return pl.pallas_call(
        _model_kernel,
        out_shape=jax.ShapeDtypeStruct((M, out_cols), jnp.float32),
        in_specs=[vmem_spec] * 3,
        out_specs=vmem_spec,
    )(x1.astype(jnp.float32), rhs, wf)


def _reference(x1, x2, w1, w2, w3):
    p = x1 @ x2
    v1 = jnp.concatenate([p, p], axis=1)
    x2x2 = jnp.concatenate([x2, x2], axis=1)
    return jnp.concatenate(
        [v1 @ w1,
         x1 @ jnp.concatenate([x1, x2], axis=1),
         v1 @ w2,
         x1 @ x2x2,
         v1 @ w3,
         x1 @ x2x2],
        axis=1,
    )


if __name__ == "__main__":
    M, N = 8, 16  # x1: (M, M), x2: (M, N)

    key = jax.random.PRNGKey(0)
    k1, k2, k3, k4, k5 = jax.random.split(key, 5)
    x1 = jax.random.normal(k1, (M, M), dtype=jnp.float32)
    x2 = jax.random.normal(k2, (M, N), dtype=jnp.float32)
    # deterministic stand-ins for the module's torch.rand(...) weights
    w1 = jax.random.uniform(k3, (2 * N, 1), dtype=jnp.float32)
    w2 = jax.random.uniform(k4, (2 * N, 1), dtype=jnp.float32)
    w3 = jax.random.uniform(k5, (2 * N, 1), dtype=jnp.float32)

    out = model_forward(x1, x2, w1, w2, w3)
    jax.block_until_ready(out)

    ref = _reference(x1, x2, w1, w2, w3)
    assert out.shape == ref.shape, (out.shape, ref.shape)
    assert jnp.allclose(out, ref, atol=1e-4, rtol=1e-4)
    print("KERNEL_OK")
</pallas_src>

<mosaic_0001>
module attributes {stable_mosaic.version = 11 : i64} {
  func.func @_model_kernel(%arg0: memref<8x8xf32, #tpu.memory_space<vmem>>, %arg1: memref<8x24xf32, #tpu.memory_space<vmem>>, %arg2: memref<16x3xf32, #tpu.memory_space<vmem>>, %arg3: memref<8x91xf32, #tpu.memory_space<vmem>>) attributes {dimension_semantics = [], scalar_prefetch = 0 : i64, scratch_operands = 0 : i64, tpu.core_type = #tpu.core_type<tc>} {
    %c0 = arith.constant 0 : index
    %c0_0 = arith.constant 0 : index
    %0 = vector.load %arg0[%c0, %c0_0] : memref<8x8xf32, #tpu.memory_space<vmem>>, vector<8x8xf32>
    %c0_1 = arith.constant 0 : index
    %c0_2 = arith.constant 0 : index
    %1 = vector.load %arg1[%c0_1, %c0_2] : memref<8x24xf32, #tpu.memory_space<vmem>>, vector<8x24xf32>
    %cst = arith.constant dense<0.000000e+00> : vector<8x24xf32>
    %2 = tpu.matmul %0, %1, %cst {dimension_numbers = #tpu.dot_dimension_numbers<[1], [0], [0], [1], [0, 0, 1, 1], [], []>} : vector<8x8xf32>, vector<8x24xf32>, vector<8x24xf32> -> vector<8x24xf32>
    %3 = vector.extract_strided_slice %2 {offsets = [0, 8], sizes = [8, 16], strides = [1, 1]} : vector<8x24xf32> to vector<8x16xf32>
    %c0_3 = arith.constant 0 : index
    %c0_4 = arith.constant 0 : index
    %4 = vector.load %arg2[%c0_3, %c0_4] : memref<16x3xf32, #tpu.memory_space<vmem>>, vector<16x3xf32>
    %cst_5 = arith.constant dense<0.000000e+00> : vector<8x3xf32>
    %5 = tpu.matmul %3, %4, %cst_5 {dimension_numbers = #tpu.dot_dimension_numbers<[1], [0], [0], [1], [0, 0, 1, 1], [], []>} : vector<8x16xf32>, vector<16x3xf32>, vector<8x3xf32> -> vector<8x3xf32>
    %6 = vector.extract_strided_slice %5 {offsets = [0, 0], sizes = [8, 1], strides = [1, 1]} : vector<8x3xf32> to vector<8x1xf32>
    %7 = vector.extract_strided_slice %5 {offsets = [0, 1], sizes = [8, 1], strides = [1, 1]} : vector<8x3xf32> to vector<8x1xf32>
    %8 = vector.extract_strided_slice %5 {offsets = [0, 2], sizes = [8, 1], strides = [1, 1]} : vector<8x3xf32> to vector<8x1xf32>
    %9 = tpu.concatenate %6, %2, %7, %3, %3, %8, %3, %3 in 1 : vector<8x1xf32>, vector<8x24xf32>, vector<8x1xf32>, vector<8x16xf32>, vector<8x16xf32>, vector<8x1xf32>, vector<8x16xf32>, vector<8x16xf32> -> vector<8x91xf32>
    %c0_6 = arith.constant 0 : index
    %c0_7 = arith.constant 0 : index
    %10 = vector.load %arg3[%c0_6, %c0_7] : memref<8x91xf32, #tpu.memory_space<vmem>>, vector<8x91xf32>
    tpu.vector_store %arg3[%c0_6, %c0_7], %9 {strides = array<i32>} : memref<8x91xf32, #tpu.memory_space<vmem>>, vector<8x91xf32>,
    return
  }
}

</mosaic_0001>

<bundles_post_ra>
// kernel: tpu_custom_call.1
= control target key start
LH: loop header
LB: loop body
LE: loop exit
PB: predicated region body
PF: predicated region fallthrough
CT: control target
= control target key end

     0   :  { %vm17_vm0 = vcmask 64512   ;;  %s204_s0 = inlined_call_operand.vmem [shape: f32[8,8], index: 0, kind: input, shape index: {}]   ;;  %s205_s1 = inlined_call_operand.vmem [shape: f32[8,24], index: 1, kind: input, shape index: {}]   ;;  %s206_s2 = inlined_call_operand.vmem [shape: f32[16,3], index: 2, kind: input, shape index: {}]   ;;  %s207_s3 = inlined_call_operand.hbm [shape: f32[8,91], index: 3, kind: output, shape index: {}]  }
   0x1   :  { %v16_v0 = vld [vmem:[%s205_s1] sm:$0xff] }
   0x2   :  { %v15_v1 = vld [vmem:[%s204_s0] sm:$0xff]  ;;  %36 = vmatpush.msra.mxu0 %v16_v0 }
   0x3   :  { %8 = vsyncpa [#allocation3], 0  ;;  %123 = vmatmul.msk.f32.vlgmr.msra.gmra.mxu0 %vm17_vm0, %v15_v1  ;;  %s160_s16 = smov 34   ;;  %s161_s17 = smov 18   ;;  %v42_v3 = vld [vmem:[%s206_s2 + $0x8] sm:$0xff]  ;;  %v41_v4 = vld [vmem:[%s206_s2] sm:$0xff] }
   0x4   :  { %s162_s18 = smov 120   ;;  %s163_s19 = smov 1   ;;  %63 = vmatpush.msra.mxu1 %v42_v3  ;;  %vm46_vm1 = vcmask 130048   ;;  %vm91_vm2 = vcmask 7168   ;;  %vm93_vm3 = vcmask 203776   ;;  %vm95_vm4 = vcmask 211968  }
   0x5   :  { %s164_s20 = smov 51   ;;  %s165_s23 = smov 56   ;;  %vm97_vm5 = vcmask 343040   ;;  %vm99_vm6 = vcmask 474112   ;;  %vm101_vm7 = vcmask 482304   ;;  %vm103_vm8 = vcmask 613376  }
   0x6   :  { %64 = vmatpush.msra.mxu1 %v41_v4  ;;  %s166_s24 = smov 24   ;;  %s167_s25 = smov 67   ;;  %vm105_vm9 = vcmask 744448  }
   0x7   :  { %s168_s2 = smov [#allocation2]   ;;  %s114_s29 = sshll.u32 %s207_s3, 4  ;;  %s115_s29 = int_to_ptr.hbm [resolvable:$true] %s114_s29 }
   0x8   :  { %s112_s26 = sshll.u32 %s168_s2, 4  ;;  %s113_s26 = int_to_ptr.vmem [resolvable:$true] %s112_s26 }
  0x80   :  { %v38_v2 = vpop.f32.mrf.mxu0 }
  0x81   :  { %79 = vrot.lane.b32.xlu2 %v38_v2, %s160_s16  ;;  %76 = vrot.lane.b32.xlu1 %v38_v2, %s161_s17 }
  0x82   :  { %44 = vrot.lane.b32.xlu0 %v38_v2, %s162_s18 }
  0x8a   :  { %69 = vrot.lane.b32.xlu0 %v38_v2, %s163_s19 }
  0x92   :  { %85 = vrot.lane.b32.xlu0 %v38_v2, %s164_s20 }
  0xdb   :  { %v80_v8 = vpop.permute.xlu2 %79 }
  0xf3   :  { %v77_v7 = vpop.permute.xlu1 %76 }
  0xf4   :  { %v45_v5 = vpop.permute.xlu0 %44 }
  0xf5   :  { %124 = vmatmul.msk.f32.vlgmr.msra.gmra.mxu1 %vm46_vm1, %v45_v5 }
  0xfc   :  { %v70_v9 = vpop.permute.xlu0 %69 }
 0x104   :  { %v86_v17 = vpop.permute.xlu0 %85 }
 0x172   :  { %v66_v6 = vpop.f32.mrf.mxu1 }
 0x173   :  { %82 = vrot.lane.b32.xlu2 %v66_v6, %s165_s23  ;;  %73 = vrot.lane.b32.xlu1 %v66_v6, %s166_s24  ;;  %v92_v10 = vsel %vm91_vm2, %v66_v6, %v70_v9 }
 0x17b   :  { %88 = vrot.lane.b32.xlu1 %v38_v2, %s167_s25 }
 0x1cd   :  { %v83_v15 = vpop.permute.xlu2 %82 }
 0x1e5   :  { %v74_v11 = vpop.permute.xlu1 %73 }
 0x1e6   :  { %v94_v12 = vsel %vm93_vm3, %v92_v10, %v74_v11 }
 0x1e7   :  { %v96_v13 = vsel %vm95_vm4, %v94_v12, %v77_v7 }
 0x1e8   :  { %v98_v14 = vsel %vm97_vm5, %v96_v13, %v80_v8 }
 0x1e9   :  { %v100_v16 = vsel %vm99_vm6, %v98_v14, %v83_v15 }
 0x1ea   :  { %v102_v19 = vsel %vm101_vm7, %v100_v16, %v86_v17 }
 0x1ed   :  { %v89_v18 = vpop.permute.xlu1 %88 }
 0x1ee   :  { %v104_v20 = vsel %vm103_vm8, %v102_v19, %v89_v18 }
 0x1ef   :  { %106 = vst.msk [vmem:[#allocation2] sm:$0xff] %vm105_vm9, %v104_v20 }
 0x1f0   :  { %117 = dma.vmem_to_hbm [thread:$0]  %s113_s26, 128, %s115_s29, [#allocation3]  }
 0x1f1   :  { %158 = dma.done.wait [#allocation3], 128  }
 0x1f2   :  { %159 = vsyncadd [#allocation3], 4294967168 }
 0x1f3   :  { %122 = vsyncpa [#allocation3], 1 }

</bundles_post_ra>
